<compile_context>
chip_gen: v6e
topology: v6e:2x2x1
jax: 0.10.0
libtpu: 0.0.40
codegen_flags: <defaults>
</compile_context>

<pallas_src>
import jax
import jax.numpy as jnp
from jax.experimental import pallas as pl
from jax.experimental.pallas import tpu as pltpu


def _max_consensus_kernel(x_ref, val_ref, idx_ref):
    # x_ref block: (BN, T, CT) -- T on sublanes, CT on lanes.
    x = x_ref[...]
    t = x.shape[1]
    is_float = jnp.issubdtype(x.dtype, jnp.floating)

    # Max over the consensus axis: sublane (XLU) reduction -> (BN, CT).
    m = jnp.max(x, axis=1)
    val_ref[...] = m.astype(val_ref.dtype)

    if t <= 64:
        # Fused argmax: reverse scan over T carrying a (BN, CT) index in vregs.
        # Last write wins for the smallest matching i -> first-max semantics.
        # No (BN, T, CT) temporaries are materialized.
        idx = jnp.zeros(m.shape, dtype=jnp.int32)
        for i in range(t - 1, -1, -1):
            xi = x[:, i, :]                      # (BN, CT) sublane select
            hit = xi == m
            if is_float:
                # NaN column: x == m is all-False; flag NaN positions so the
                # returned index is the first NaN (numpy/torch semantics).
                hit = hit | jnp.isnan(xi)
            idx = jnp.where(hit, jnp.int32(i), idx)
    else:
        # Large-T fallback (not hit by typical consensus heads): masked-iota
        # argmin.  Materializes tile-sized temporaries, acceptable because the
        # wrapper sizes tiles small when T is huge.
        ids = jax.lax.broadcasted_iota(jnp.int32, x.shape, 1)
        hit = x == m[:, None, :]
        if is_float:
            hit = hit | jnp.isnan(x)
        idx = jnp.min(jnp.where(hit, ids, t), axis=1).astype(jnp.int32)

    idx_ref[...] = idx


def max_consensus(x, dim=1):
    """Pallas equivalent of MaxConsensus.forward: returns (values, indices)."""
    assert dim == 1, "kernel implemented for the module default dim=1"
    n, t, c = x.shape
    itemsize = jnp.dtype(x.dtype).itemsize
    sub = max(8, 32 // itemsize)          # sublane packing of the value dtype

    # --- scoped-VMEM budget: 75% of this chip's physical VMEM per core -------
    try:
        vmem_cap = int(pltpu.get_tpu_info().vmem_capacity_bytes)
    except Exception:  # conservative fallback (v7x-sized)
        vmem_cap = 64 * 1024 * 1024
    vmem_limit = (vmem_cap * 3) // 4
    headroom = 2 * 1024 * 1024

    def rows_that_fit(ct_):
        # Per batch-row: double-buffered input block + (BN, CT)-sized working
        # set (m/idx accumulators, a couple of live temps) + double-buffered
        # output blocks (values + int32 indices).
        per_row = 2 * t * ct_ * itemsize + ct_ * (4 * 4 + 2 * (itemsize + 4))
        return max(1, (vmem_limit - headroom) // per_row)

    # --- channel tile first: as wide (lane-dense) as possible ---------------
    if c <= 128:
        ct = c                             # small-C fallback (lane-sparse path)
    else:
        ct = (c // 128) * 128
        while ct > 128 and rows_that_fit(ct) < sub:
            ct = max(128, ((ct // 2) // 128) * 128)

    # --- rows per grid step under the budget ---------------------------------
    bn = rows_that_fit(ct)
    if bn >= n:
        bn = n
    elif bn >= sub:
        bn = (bn // sub) * sub             # sublane-clean output blocks
    # else: a single (1, T, 128) row barely fits; keep bn as-is (masked stores).
    # TODO(synk): add an "arbitrary" T grid axis with running max/argmax scratch
    # if one row of T*CT ever exceeds the VMEM budget (extremely long T).

    # --- make sure a megacore chip (v7x: 2 TCs) gets >= 2 parallel steps -----
    if pl.cdiv(n, bn) * pl.cdiv(c, ct) == 1:
        if c >= 256 and ct >= 256:
            ct = max(128, ((ct // 2) // 128) * 128)    # stay 128-multiple
        elif n >= 2 * sub:
            bn = ((-(-n // 2) + sub - 1) // sub) * sub  # aligned half, < n
        # tiny problems stay at grid (1, 1): nothing to gain from splitting.

    grid = (pl.cdiv(n, bn), pl.cdiv(c, ct))

    cost = pl.CostEstimate(
        flops=2 * n * t * c,
        transcendentals=0,
        bytes_accessed=n * t * c * itemsize + n * c * (itemsize + 4),
    )

    values, indices = pl.pallas_call(
        _max_consensus_kernel,
        grid=grid,
        in_specs=[pl.BlockSpec((bn, t, ct), lambda i, j: (i, 0, j))],
        out_specs=(
            pl.BlockSpec((bn, ct), lambda i, j: (i, j)),
            pl.BlockSpec((bn, ct), lambda i, j: (i, j)),
        ),
        out_shape=(
            jax.ShapeDtypeStruct((n, c), x.dtype),
            jax.ShapeDtypeStruct((n, c), jnp.int32),
        ),
        compiler_params=pltpu.CompilerParams(
            dimension_semantics=("parallel", "parallel"),
            vmem_limit_bytes=int(vmem_limit),
        ),
        cost_estimate=cost,
    )(x)

    # keepdim=True -> (N, 1, C). Pure metadata reshape, outside the kernel.
    return values.reshape(n, 1, c), indices.reshape(n, 1, c)


def _check(x):
    values, indices = max_consensus(x, dim=1)
    jax.block_until_ready((values, indices))
    ref_vals = jnp.max(x, axis=1, keepdims=True)
    ref_idx = jnp.argmax(x, axis=1, keepdims=True).astype(jnp.int32)
    assert values.shape == ref_vals.shape and indices.shape == ref_idx.shape
    assert jnp.allclose(values, ref_vals)
    assert jnp.array_equal(indices, ref_idx)


if __name__ == "__main__":
    key = jax.random.PRNGKey(0)
    k0, k1, k2, k3, k4 = jax.random.split(key, 5)

    # Small consensus-head shape: batch=2, segments=8, C=32 (small-C path).
    _check(jax.random.normal(k0, (2, 8, 32), dtype=jnp.float32))

    # Lane-dense channel path (C >= 128), odd batch -> channel-split grid.
    _check(jax.random.normal(k1, (3, 5, 256), dtype=jnp.float32))

    # Ties (first-index semantics) + partial channel block (C=130, not 128k).
    _check(jax.random.randint(k2, (2, 8, 130), 0, 3).astype(jnp.float32))

    # Batch large enough to exercise the batch-split (megacore) path.
    _check(jax.random.normal(k3, (16, 8, 128), dtype=jnp.float32))

    # bf16 values path (indices stay int32).
    _check(jax.random.normal(k4, (4, 8, 256), dtype=jnp.bfloat16))

    print("KERNEL_OK")
</pallas_src>

<mosaic_0001>
module attributes {stable_mosaic.version = 11 : i64} {
  func.func @_max_consensus_kernel(%arg0: i32, %arg1: i32, %arg2: memref<2x8x32xf32, #tpu.memory_space<vmem>>, %arg3: memref<2x32xf32, #tpu.memory_space<vmem>>, %arg4: memref<2x32xi32, #tpu.memory_space<vmem>>) attributes {dimension_semantics = [#tpu.dimension_semantics<parallel>, #tpu.dimension_semantics<parallel>], iteration_bounds = array<i64: 1, 1>, scalar_prefetch = 0 : i64, scratch_operands = 0 : i64, tpu.core_type = #tpu.core_type<tc>, window_params = [{transform_indices = @transform_0, window_bounds = array<i64: 2, 8, 32>}, {transform_indices = @transform_1, window_bounds = array<i64: 2, 32>}, {transform_indices = @transform_2, window_bounds = array<i64: 2, 32>}]} {
    %c0 = arith.constant 0 : index
    %c0_0 = arith.constant 0 : index
    %c0_1 = arith.constant 0 : index
    %0 = vector.load %arg2[%c0, %c0_0, %c0_1] : memref<2x8x32xf32, #tpu.memory_space<vmem>>, vector<2x8x32xf32>
    %cst = arith.constant dense<0xFF800000> : vector<2x32xf32>
    %1 = vector.multi_reduction <maximumf>, %0, %cst [1] : vector<2x8x32xf32> to vector<2x32xf32>
    %c0_2 = arith.constant 0 : index
    %c0_3 = arith.constant 0 : index
    %2 = vector.load %arg3[%c0_2, %c0_3] : memref<2x32xf32, #tpu.memory_space<vmem>>, vector<2x32xf32>
    tpu.vector_store %arg3[%c0_2, %c0_3], %1 {strides = array<i32>} : memref<2x32xf32, #tpu.memory_space<vmem>>, vector<2x32xf32>,
    %c0_i32 = arith.constant 0 : i32
    %3 = vector.broadcast %c0_i32 : i32 to vector<2x32xi32>
    %4 = vector.extract_strided_slice %0 {offsets = [0, 7, 0], sizes = [2, 1, 32], strides = [1, 1, 1]} : vector<2x8x32xf32> to vector<2x1x32xf32>
    %5 = vector.shape_cast %4 : vector<2x1x32xf32> to vector<2x32xf32>
    %6 = arith.cmpf oeq, %5, %1 : vector<2x32xf32>
    %7 = arith.cmpf one, %5, %5 : vector<2x32xf32>
    %8 = arith.ori %6, %7 : vector<2x32xi1>
    %c7_i32 = arith.constant 7 : i32
    %9 = vector.broadcast %c7_i32 : i32 to vector<2x32xi32>
    %10 = arith.select %8, %9, %3 : vector<2x32xi1>, vector<2x32xi32>
    %11 = vector.extract_strided_slice %0 {offsets = [0, 6, 0], sizes = [2, 1, 32], strides = [1, 1, 1]} : vector<2x8x32xf32> to vector<2x1x32xf32>
    %12 = vector.shape_cast %11 : vector<2x1x32xf32> to vector<2x32xf32>
    %13 = arith.cmpf oeq, %12, %1 : vector<2x32xf32>
    %14 = arith.cmpf one, %12, %12 : vector<2x32xf32>
    %15 = arith.ori %13, %14 : vector<2x32xi1>
    %c6_i32 = arith.constant 6 : i32
    %16 = vector.broadcast %c6_i32 : i32 to vector<2x32xi32>
    %17 = arith.select %15, %16, %10 : vector<2x32xi1>, vector<2x32xi32>
    %18 = vector.extract_strided_slice %0 {offsets = [0, 5, 0], sizes = [2, 1, 32], strides = [1, 1, 1]} : vector<2x8x32xf32> to vector<2x1x32xf32>
    %19 = vector.shape_cast %18 : vector<2x1x32xf32> to vector<2x32xf32>
    %20 = arith.cmpf oeq, %19, %1 : vector<2x32xf32>
    %21 = arith.cmpf one, %19, %19 : vector<2x32xf32>
    %22 = arith.ori %20, %21 : vector<2x32xi1>
    %c5_i32 = arith.constant 5 : i32
    %23 = vector.broadcast %c5_i32 : i32 to vector<2x32xi32>
    %24 = arith.select %22, %23, %17 : vector<2x32xi1>, vector<2x32xi32>
    %25 = vector.extract_strided_slice %0 {offsets = [0, 4, 0], sizes = [2, 1, 32], strides = [1, 1, 1]} : vector<2x8x32xf32> to vector<2x1x32xf32>
    %26 = vector.shape_cast %25 : vector<2x1x32xf32> to vector<2x32xf32>
    %27 = arith.cmpf oeq, %26, %1 : vector<2x32xf32>
    %28 = arith.cmpf one, %26, %26 : vector<2x32xf32>
    %29 = arith.ori %27, %28 : vector<2x32xi1>
    %c4_i32 = arith.constant 4 : i32
    %30 = vector.broadcast %c4_i32 : i32 to vector<2x32xi32>
    %31 = arith.select %29, %30, %24 : vector<2x32xi1>, vector<2x32xi32>
    %32 = vector.extract_strided_slice %0 {offsets = [0, 3, 0], sizes = [2, 1, 32], strides = [1, 1, 1]} : vector<2x8x32xf32> to vector<2x1x32xf32>
    %33 = vector.shape_cast %32 : vector<2x1x32xf32> to vector<2x32xf32>
    %34 = arith.cmpf oeq, %33, %1 : vector<2x32xf32>
    %35 = arith.cmpf one, %33, %33 : vector<2x32xf32>
    %36 = arith.ori %34, %35 : vector<2x32xi1>
    %c3_i32 = arith.constant 3 : i32
    %37 = vector.broadcast %c3_i32 : i32 to vector<2x32xi32>
    %38 = arith.select %36, %37, %31 : vector<2x32xi1>, vector<2x32xi32>
    %39 = vector.extract_strided_slice %0 {offsets = [0, 2, 0], sizes = [2, 1, 32], strides = [1, 1, 1]} : vector<2x8x32xf32> to vector<2x1x32xf32>
    %40 = vector.shape_cast %39 : vector<2x1x32xf32> to vector<2x32xf32>
    %41 = arith.cmpf oeq, %40, %1 : vector<2x32xf32>
    %42 = arith.cmpf one, %40, %40 : vector<2x32xf32>
    %43 = arith.ori %41, %42 : vector<2x32xi1>
    %c2_i32 = arith.constant 2 : i32
    %44 = vector.broadcast %c2_i32 : i32 to vector<2x32xi32>
    %45 = arith.select %43, %44, %38 : vector<2x32xi1>, vector<2x32xi32>
    %46 = vector.extract_strided_slice %0 {offsets = [0, 1, 0], sizes = [2, 1, 32], strides = [1, 1, 1]} : vector<2x8x32xf32> to vector<2x1x32xf32>
    %47 = vector.shape_cast %46 : vector<2x1x32xf32> to vector<2x32xf32>
    %48 = arith.cmpf oeq, %47, %1 : vector<2x32xf32>
    %49 = arith.cmpf one, %47, %47 : vector<2x32xf32>
    %50 = arith.ori %48, %49 : vector<2x32xi1>
    %c1_i32 = arith.constant 1 : i32
    %51 = vector.broadcast %c1_i32 : i32 to vector<2x32xi32>
    %52 = arith.select %50, %51, %45 : vector<2x32xi1>, vector<2x32xi32>
    %53 = vector.extract_strided_slice %0 {offsets = [0, 0, 0], sizes = [2, 1, 32], strides = [1, 1, 1]} : vector<2x8x32xf32> to vector<2x1x32xf32>
    %54 = vector.shape_cast %53 : vector<2x1x32xf32> to vector<2x32xf32>
    %55 = arith.cmpf oeq, %54, %1 : vector<2x32xf32>
    %56 = arith.cmpf one, %54, %54 : vector<2x32xf32>
    %57 = arith.ori %55, %56 : vector<2x32xi1>
    %c0_i32_4 = arith.constant 0 : i32
    %58 = vector.broadcast %c0_i32_4 : i32 to vector<2x32xi32>
    %59 = arith.select %57, %58, %52 : vector<2x32xi1>, vector<2x32xi32>
    %c0_5 = arith.constant 0 : index
    %c0_6 = arith.constant 0 : index
    %60 = vector.load %arg4[%c0_5, %c0_6] : memref<2x32xi32, #tpu.memory_space<vmem>>, vector<2x32xi32>
    tpu.vector_store %arg4[%c0_5, %c0_6], %59 {strides = array<i32>} : memref<2x32xi32, #tpu.memory_space<vmem>>, vector<2x32xi32>,
    return
  }
  func.func @transform_0(%arg0: i32, %arg1: i32) -> (i32, i32, i32) {
    %c0_i32 = arith.constant 0 : i32
    %c0_i32_0 = arith.constant 0 : i32
    return %arg0, %c0_i32, %arg1 : i32, i32, i32
  }
  func.func @transform_1(%arg0: i32, %arg1: i32) -> (i32, i32) {
    %c0_i32 = arith.constant 0 : i32
    return %arg0, %arg1 : i32, i32
  }
  func.func @transform_2(%arg0: i32, %arg1: i32) -> (i32, i32) {
    %c0_i32 = arith.constant 0 : i32
    return %arg0, %arg1 : i32, i32
  }
}

</mosaic_0001>

<bundles_post_ra>
// kernel: tpu_custom_call.1
= control target key start
LH: loop header
LB: loop body
LE: loop exit
PB: predicated region body
PF: predicated region fallthrough
CT: control target
= control target key end

     0   :  { %8 = vsyncpa [#allocation3], 0  ;;  %s264_s0 = inlined_call_operand.hbm [shape: f32[2,8,32], index: 0, kind: input, shape index: {}]   ;;  %s265_s1 = inlined_call_operand.hbm [shape: f32[2,32], index: 1, kind: output, shape index: {0}]   ;;  %s266_s2 = inlined_call_operand.hbm [shape: s32[2,32], index: 2, kind: output, shape index: {1}]  }
   0x1   :  { %9 = vsyncpa [#allocation4], 0 }
   0x2   :  { %10 = vsyncpa [#allocation7], 0  ;;  %s190_s9 = smov [#allocation2]  }
   0x3   :  { %s16_s10 = sshll.u32 %s190_s9, 4  ;;  %s17_s10 = int_to_ptr.vmem [resolvable:$true] %s16_s10 }
   0x4   :  { %s132_s11 = scalar_lea.vmem %s17_s10, 256  ;;  %p137_p1 = scmp.lt.s32.totalorder %s17_s10, %s17_s10 }
   0x5   :  { %p133_p0 = scmp.ne.s32.totalorder %s17_s10, %s132_s11  ;;  %p138_p2 = scmp.lt.s32.totalorder %s132_s11, %s132_s11 }
   0x7   :  { %p139_p3 = por %p138_p2, %p137_p1 }
   0x9   :  { %p140_p4 = pnand %p139_p3, %p133_p0 }
   0xb   :  { %143 = shalt.err (!%p140_p4)
}
   0xc   :  { %s191_s12 = smov 128   ;;  %s192_s13 = smov 8  }
   0xd   :  { %22 = dma.hbm_to_vmem [thread:$0]  %s264_s0, 256, %s17_s10, [#allocation3], %s191_s12, %s191_s12, %s192_s13  }
   0xe   :  { %184 = dma.done.wait [#allocation3], 256  }
   0xf   :  { %185 = vsyncadd [#allocation3], 4294967040  ;;  %vm28_vm0 = vcmask 261120   ;;  %v26_v0 = vld [vmem:[#allocation2] sm:$0xff]  ;;  %v27_v1 = vld [vmem:[#allocation2 + $0x8] sm:$0xff]  ;;  %s193_s16 = smov [#allocation5]  }
  0x10   :  { %v29_v2 = vsel %vm28_vm0, %v26_v0, -inf  ;;  %v36_v3 = vsel %vm28_vm0, %v27_v1, -inf  ;;  %s95_s17 = sshll.u32 %s193_s16, 4  ;;  %vm45_vm1 = vcmask 1041409   ;;  %vm48_vm2 = vcmask 254976   ;;  %s96_s17 = int_to_ptr.vmem [resolvable:$true] %s95_s17 }
  0x11   :  { %v30_v4 = vrot.slane %v29_v2, 4  ;;  %v37_v5 = vrot.slane %v36_v3, 4  ;;  %vm52_vm3 = vcmp.ne.f32.partialorder %v26_v0, %v26_v0  ;;  %vm53_vm4 = vcmp.ne.f32.partialorder %v27_v1, %v27_v1  ;;  %s144_s0 = scalar_lea.vmem %s96_s17, 32  ;;  %p149_p6 = scmp.lt.s32.totalorder %s96_s17, %s96_s17 }
  0x12   :  { %v194_v19 = vmov 0   ;;  %p145_p5 = scmp.ne.s32.totalorder %s96_s17, %s144_s0  ;;  %p150_p7 = scmp.lt.s32.totalorder %s144_s0, %s144_s0 }
  0x13   :  { %v31_v6 = vmax.f32 %v29_v2, %v30_v4  ;;  %v38_v7 = vmax.f32 %v36_v3, %v37_v5 }
  0x14   :  { %p151_p8 = por %p150_p7, %p149_p6 }
  0x15   :  { %v32_v8 = vrot.slane %v31_v6, 2  ;;  %v39_v9 = vrot.slane %v38_v7, 2 }
  0x16   :  { %p152_p9 = pnand %p151_p8, %p145_p5 }
  0x17   :  { %v33_v10 = vmax.f32 %v31_v6, %v32_v8  ;;  %v40_v11 = vmax.f32 %v38_v7, %v39_v9 }
  0x19   :  { %v34_v12 = vrot.slane %v33_v10, 1  ;;  %v41_v13 = vrot.slane %v40_v11, 1 }
  0x1b   :  { %v35_v14 = vmax.f32 %v33_v10, %v34_v12  ;;  %v42_v15 = vmax.f32 %v40_v11, %v41_v13 }
  0x1d   :  { %v46_v16 = vsel %vm45_vm1, %v42_v15, %v35_v14  ;;  %vm50_vm5 = vcmp.eq.f32.partialorder %v26_v0, %v35_v14  ;;  %vm51_vm6 = vcmp.eq.f32.partialorder %v27_v1, %v42_v15 }
  0x1e   :  { %49 = vst.msk [vmem:[#allocation5] sm:$0x3] %vm48_vm2, %v46_v16  ;;  %vm216_vm7 = vmor %vm50_vm5, %vm52_vm3 }
  0x1f   :  { %vm220_vm8 = vmor %vm51_vm6, %vm53_vm4  ;;  %v56_v20 = vsel %vm216_vm7, 7, %v194_v19 }
  0x20   :  { %155 = shalt.err (!%p152_p9)
}
  0x21   :  { %98 = dma.vmem_to_hbm [thread:$0]  %s96_s17, 32, %s265_s1, [#allocation4]   ;;  %v57_v21 = vsel %vm220_vm8, 7, %v194_v19  ;;  %v58_v22 = vrot.slane %v56_v20, 1 }
  0x22   :  { %v59_v23 = vrot.slane %v57_v21, 1  ;;  %s195_s1 = smov [#allocation6]  }
  0x23   :  { %v60_v24 = vsel %vm216_vm7, 6, %v58_v22  ;;  %s105_s20 = sshll.u32 %s195_s1, 4  ;;  %s106_s20 = int_to_ptr.vmem [resolvable:$true] %s105_s20 }
  0x24   :  { %v61_v25 = vsel %vm220_vm8, 6, %v59_v23  ;;  %v62_v26 = vrot.slane %v60_v24, 1  ;;  %s164_s21 = scalar_lea.vmem %s106_s20, 32  ;;  %p169_p11 = scmp.lt.s32.totalorder %s106_s20, %s106_s20 }
  0x25   :  { %v63_v27 = vrot.slane %v61_v25, 1  ;;  %p165_p10 = scmp.ne.s32.totalorder %s106_s20, %s164_s21  ;;  %p170_p12 = scmp.lt.s32.totalorder %s164_s21, %s164_s21 }
  0x26   :  { %v64_v28 = vsel %vm216_vm7, 5, %v62_v26 }
  0x27   :  { %v65_v29 = vsel %vm220_vm8, 5, %v63_v27  ;;  %v66_v30 = vrot.slane %v64_v28, 1  ;;  %p171_p13 = por %p170_p12, %p169_p11 }
  0x28   :  { %v67_v31 = vrot.slane %v65_v29, 1 }
  0x29   :  { %v68_v32 = vsel %vm216_vm7, 4, %v66_v30  ;;  %p172_p0 = pnand %p171_p13, %p165_p10 }
  0x2a   :  { %v69_v33 = vsel %vm220_vm8, 4, %v67_v31  ;;  %v70_v34 = vrot.slane %v68_v32, 1 }
  0x2b   :  { %v71_v35 = vrot.slane %v69_v33, 1 }
  0x2c   :  { %v72_v36 = vsel %vm216_vm7, 3, %v70_v34 }
  0x2d   :  { %v73_v37 = vsel %vm220_vm8, 3, %v71_v35  ;;  %v74_v38 = vrot.slane %v72_v36, 1 }
  0x2e   :  { %v75_v39 = vrot.slane %v73_v37, 1 }
  0x2f   :  { %v76_v40 = vsel %vm216_vm7, 2, %v74_v38 }
  0x30   :  { %v77_v41 = vsel %vm220_vm8, 2, %v75_v39  ;;  %v78_v42 = vrot.slane %v76_v40, 1 }
  0x31   :  { %v79_v43 = vrot.slane %v77_v41, 1 }
  0x32   :  { %v80_v44 = vsel %vm216_vm7, 1, %v78_v42 }
  0x33   :  { %v81_v45 = vsel %vm220_vm8, 1, %v79_v43  ;;  %v82_v46 = vrot.slane %v80_v44, 1 }
  0x34   :  { %v83_v47 = vrot.slane %v81_v45, 1 }
  0x35   :  { %v84_v48 = vsel %vm216_vm7, 0, %v82_v46 }
  0x36   :  { %v85_v49 = vsel %vm220_vm8, 0, %v83_v47 }
  0x37   :  { %v86_v50 = vrot.slane %v85_v49, 7 }
  0x39   :  { %v87_v51 = vsel %vm45_vm1, %v86_v50, %v84_v48 }
  0x3a   :  { %88 = vst.msk [vmem:[#allocation6] sm:$0x3] %vm48_vm2, %v87_v51 }
  0x3b   :  { %175 = shalt.err (!%p172_p0)
}
  0x3c   :  { %108 = dma.vmem_to_hbm [thread:$0]  %s106_s20, 32, %s266_s2, [#allocation7]  }
  0x3d   :  { %186 = dma.done.wait [#allocation4], 32  }
  0x3e   :  { %187 = vsyncadd [#allocation4], 4294967264 }
  0x3f   :  { %188 = dma.done.wait [#allocation7], 32  }
  0x40   :  { %189 = vsyncadd [#allocation7], 4294967264 }
  0x41   :  { %115 = vsyncpa [#allocation3], 1 }
  0x42   :  { %116 = vsyncpa [#allocation4], 1 }
  0x43   :  { %117 = vsyncpa [#allocation7], 1 }

</bundles_post_ra>
